<compile_context>
chip_gen: v6e
topology: v6e:2x2x1
jax: 0.10.0
libtpu: 0.0.40
codegen_flags: <defaults>
</compile_context>

<pallas_src>
import functools

import jax
import jax.numpy as jnp
from jax import lax
from jax.experimental import pallas as pl
from jax.experimental.pallas import tpu as pltpu


def _round_up(v, m):
    return ((v + m - 1) // m) * m


# ---------------------------------------------------------------------------
# Stage 1: pre_sup[s] = X @ W_s   (small, hoisted out of the row-tile loop)
# ---------------------------------------------------------------------------
def _presup_kernel(x_ref, w_ref, p_ref):
    # x_ref: (TN1, D) f32, w_ref: (D, F) f32 (squeezed lead dim), p_ref: (TN1, F) bf16
    p_ref[...] = jnp.dot(
        x_ref[...], w_ref[...], preferred_element_type=jnp.float32
    ).astype(p_ref.dtype)


def _compute_presup(x_pad, weights, *, row_tile=256):
    """x_pad: (Nk, D) f32 (rows >= N are zeros); weights: (S, D, F) f32 -> (S, Nk, F) bf16."""
    Nk, D = x_pad.shape
    S, _, F = weights.shape
    TN1 = min(row_tile, Nk)            # Nk is a multiple of 128, so TN1 is 8-aligned
    n_tiles = pl.cdiv(Nk, TN1)
    return pl.pallas_call(
        _presup_kernel,
        out_shape=jax.ShapeDtypeStruct((S, Nk, F), jnp.bfloat16),
        grid_spec=pltpu.PrefetchScalarGridSpec(
            num_scalar_prefetch=0,
            grid=(n_tiles, S),
            in_specs=[
                pl.BlockSpec((TN1, D), lambda i, s: (i, 0)),     # X row tile
                pl.BlockSpec((None, D, F), lambda i, s: (s, 0, 0)),  # W_s (squeezed)
            ],
            out_specs=pl.BlockSpec((None, TN1, F), lambda i, s: (s, i, 0)),
        ),
        compiler_params=pltpu.CompilerParams(
            dimension_semantics=("parallel", "arbitrary"),
            vmem_limit_bytes=48 * 1024 * 1024,
        ),
    )(x_pad, weights)


# ---------------------------------------------------------------------------
# Stage 2: out[row tile] = sum_k sum_s A_s[row tile, k tile] @ pre_sup[s][k tile]
# ---------------------------------------------------------------------------
def _gcn_kernel(a_ref, p_ref, o_ref, acc_ref, *, num_supports, apply_relu,
                n_cols, tile_k, mask_cols):
    # a_ref: (S, TN, TK) f32 support tiles (streamed from HBM, cast here)
    # p_ref: (S, TK, F)  bf16 pre_sup tiles (rows >= N are exact zeros)
    # o_ref: (TN, F)     f32, written only at the last K step
    # acc_ref: (TN, F)   f32 VMEM scratch accumulator
    k = pl.program_id(1)

    @pl.when(k == 0)
    def _init():
        acc_ref[...] = jnp.zeros_like(acc_ref)

    for s in range(num_supports):  # S is tiny (e.g. 2): unroll in-kernel
        a_s = a_ref[s]             # (TN, TK) f32
        if mask_cols:
            # Ragged last K tile: zero out-of-bounds columns so garbage (possibly
            # NaN) never reaches the MXU. Only traced when N % TK != 0.
            limit = n_cols - k * tile_k
            col = lax.broadcasted_iota(jnp.int32, a_s.shape, 1)
            a_s = jnp.where(col < limit, a_s, 0.0)
        # Cast to bf16 in-kernel (VPU, hidden under the HBM-bound DMA) instead of
        # a wrapper-side pad+astype pass over the O(S*N^2) array.
        acc_ref[...] += jnp.dot(
            a_s.astype(jnp.bfloat16), p_ref[s], preferred_element_type=jnp.float32
        )

    @pl.when(k == pl.num_programs(1) - 1)
    def _store():
        res = acc_ref[...]
        if apply_relu:
            res = jnp.maximum(res, 0.0)
        o_ref[...] = res.astype(o_ref.dtype)


def graph_convolution(x, supports, weights, *, act_relu=False, featureless=False,
                      row_tile=512, col_tile=2048):
    """x: (N, D) f32; supports: (S, N, N) f32; weights: (S, D, F) f32 -> (N, F) f32."""
    N, D = x.shape
    S, _, F = weights.shape
    assert supports.shape == (S, N, N)
    assert row_tile % 8 == 0 and col_tile % 128 == 0

    # Tile geometry: TN sublane-aligned row tile, TK lane-aligned column tile.
    TN = min(row_tile, _round_up(N, 8))
    TK = min(col_tile, _round_up(N, 128))
    n_row = pl.cdiv(N, TN)
    n_k = pl.cdiv(N, TK)
    Nk = n_k * TK                 # pre_sup K extent (zero-padded rows, cheap O(Nk*F))
    mask_cols = (N % TK) != 0     # need in-kernel masking of the ragged K tile

    if featureless:
        # pre_sup_s = W_s directly (module's featureless path; needs D == N).
        assert D == N, "featureless=True requires input_dim == num_nodes"
        pre = weights.astype(jnp.bfloat16)
        if Nk > N:
            pre = jnp.pad(pre, ((0, 0), (0, Nk - N), (0, 0)))
    else:
        x_in = jnp.pad(x, ((0, Nk - N), (0, 0))) if Nk > N else x
        pre = _compute_presup(x_in, weights)       # (S, Nk, F) bf16, pad rows are zero

    kernel = functools.partial(
        _gcn_kernel, num_supports=S, apply_relu=act_relu,
        n_cols=N, tile_k=TK, mask_cols=mask_cols)

    out = pl.pallas_call(
        kernel,
        out_shape=jax.ShapeDtypeStruct((N, F), jnp.float32),
        grid_spec=pltpu.PrefetchScalarGridSpec(
            num_scalar_prefetch=0,
            grid=(n_row, n_k),  # row tiles (parallel) x K tiles (reduction, innermost)
            in_specs=[
                # f32 supports streamed straight from HBM (no wrapper pad/cast)
                pl.BlockSpec((S, TN, TK), lambda i, k: (0, i, k)),
                # bf16 pre_sup K tiles
                pl.BlockSpec((S, TK, F), lambda i, k: (0, k, 0)),
            ],
            out_specs=pl.BlockSpec((TN, F), lambda i, k: (i, 0)),   # lane-dense
            scratch_shapes=[pltpu.VMEM((TN, F), jnp.float32)],      # f32 accumulator
        ),
        compiler_params=pltpu.CompilerParams(
            # Row-tile axis "parallel" -> megacore sharding on v7x (2 TCs).
            dimension_semantics=("parallel", "arbitrary"),
            # ~19-27 MiB of buffers at default tiles: safe on v7x's 64 MiB VMEM;
            # v5e/v6e (128 MiB) can raise this and/or the tile sizes.
            vmem_limit_bytes=48 * 1024 * 1024,
        ),
    )(supports, pre)

    return out


if __name__ == "__main__":
    key = jax.random.PRNGKey(0)
    kx, ka, kw = jax.random.split(key, 3)

    # Small shapes consistent with the module: N nodes, D=input_dim, F=output_dim,
    # S supports.  Tiles chosen so the 2x2 (row, K) grid + scratch accumulation
    # path is exercised.
    N, D, F, S = 1024, 256, 128, 2

    x = jax.random.normal(kx, (N, D), dtype=jnp.float32)
    supports = jax.random.normal(ka, (S, N, N), dtype=jnp.float32)
    weights = jax.random.normal(kw, (S, D, F), dtype=jnp.float32)  # ~ torch.randn(D, F)

    out = graph_convolution(x, supports, weights, act_relu=False,
                            row_tile=512, col_tile=512)
    out = jax.block_until_ready(out)
    assert out.shape == (N, F)

    # Check 1 (tight): reference with the same bf16-cast matmuls + f32 accumulation.
    pre_ref = jnp.einsum("nd,sdf->snf", x, weights)
    ref_bf16 = jnp.zeros((N, F), jnp.float32)
    for i in range(S):
        ref_bf16 = ref_bf16 + jnp.dot(
            supports[i].astype(jnp.bfloat16),
            pre_ref[i].astype(jnp.bfloat16),
            preferred_element_type=jnp.float32,
        )
    assert jnp.allclose(out, ref_bf16, rtol=1e-2, atol=1.0), "mismatch vs bf16 reference"

    # Check 2 (loose): pure f32 math, verifies the forward semantics.
    ref_f32 = jnp.zeros((N, F), jnp.float32)
    for i in range(S):
        ref_f32 = ref_f32 + supports[i] @ (x @ weights[i])
    rel_err = jnp.max(jnp.abs(out - ref_f32)) / (jnp.max(jnp.abs(ref_f32)) + 1e-6)
    assert rel_err < 5e-2, f"semantic mismatch vs f32 reference: rel err {rel_err}"

    print("KERNEL_OK")
</pallas_src>

<mosaic_0001>
module attributes {stable_mosaic.version = 11 : i64} {
  func.func @_presup_kernel(%arg0: i32, %arg1: i32, %arg2: memref<256x256xf32, #tpu.memory_space<vmem>>, %arg3: memref<1x256x128xf32, #tpu.memory_space<vmem>>, %arg4: memref<1x256x128xbf16, #tpu.memory_space<vmem>>) attributes {dimension_semantics = [#tpu.dimension_semantics<parallel>, #tpu.dimension_semantics<arbitrary>], iteration_bounds = array<i64: 4, 2>, scalar_prefetch = 0 : i64, scratch_operands = 0 : i64, tpu.core_type = #tpu.core_type<tc>, window_params = [{transform_indices = @transform_0, window_bounds = array<i64: 256, 256>}, {transform_indices = @transform_1, window_bounds = array<i64: 1, 256, 128>}, {transform_indices = @transform_2, window_bounds = array<i64: 1, 256, 128>}]} {
    %c0 = arith.constant 0 : index
    %c0_0 = arith.constant 0 : index
    %0 = vector.load %arg2[%c0, %c0_0] : memref<256x256xf32, #tpu.memory_space<vmem>>, vector<256x256xf32>
    %c0_1 = arith.constant 0 : index
    %c0_2 = arith.constant 0 : index
    %c0_3 = arith.constant 0 : index
    %1 = vector.load %arg3[%c0_1, %c0_2, %c0_3] : memref<1x256x128xf32, #tpu.memory_space<vmem>>, vector<1x256x128xf32>
    %2 = vector.shape_cast %1 : vector<1x256x128xf32> to vector<256x128xf32>
    %cst = arith.constant dense<0.000000e+00> : vector<256x128xf32>
    %3 = tpu.matmul %0, %2, %cst {dimension_numbers = #tpu.dot_dimension_numbers<[1], [0], [0], [1], [0, 0, 1, 1], [], []>} : vector<256x256xf32>, vector<256x128xf32>, vector<256x128xf32> -> vector<256x128xf32>
    %4 = arith.truncf %3 : vector<256x128xf32> to vector<256x128xbf16>
    %c0_4 = arith.constant 0 : index
    %c0_5 = arith.constant 0 : index
    %c0_6 = arith.constant 0 : index
    %5 = vector.load %arg4[%c0_4, %c0_5, %c0_6] : memref<1x256x128xbf16, #tpu.memory_space<vmem>>, vector<1x256x128xbf16>
    %6 = vector.shape_cast %5 : vector<1x256x128xbf16> to vector<256x128xbf16>
    %7 = vector.shape_cast %4 : vector<256x128xbf16> to vector<1x256x128xbf16>
    tpu.vector_store %arg4[%c0_4, %c0_5, %c0_6], %7 {strides = array<i32>} : memref<1x256x128xbf16, #tpu.memory_space<vmem>>, vector<1x256x128xbf16>,
    return
  }
  func.func @transform_0(%arg0: i32, %arg1: i32) -> (i32, i32) {
    %c0_i32 = arith.constant 0 : i32
    %c0_i32_0 = arith.constant 0 : i32
    return %arg0, %c0_i32 : i32, i32
  }
  func.func @transform_1(%arg0: i32, %arg1: i32) -> (i32, i32, i32) {
    %c0_i32 = arith.constant 0 : i32
    %c0_i32_0 = arith.constant 0 : i32
    %c0_i32_1 = arith.constant 0 : i32
    return %arg1, %c0_i32, %c0_i32_0 : i32, i32, i32
  }
  func.func @transform_2(%arg0: i32, %arg1: i32) -> (i32, i32, i32) {
    %c0_i32 = arith.constant 0 : i32
    %c0_i32_0 = arith.constant 0 : i32
    return %arg1, %arg0, %c0_i32 : i32, i32, i32
  }
}

</mosaic_0001>

<bundles_post_ra>
// kernel: tpu_custom_call.1
= control target key start
LH: loop header
LB: loop body
LE: loop exit
PB: predicated region body
PF: predicated region fallthrough
CT: control target
= control target key end

     0   :  { %s1912_s0 = inlined_call_operand.hbm [shape: f32[1024,256], index: 0, kind: input, shape index: {}]   ;;  %s1913_s1 = inlined_call_operand.hbm [shape: f32[2,256,128], index: 1, kind: input, shape index: {}]   ;;  %s1914_s2 = inlined_call_operand.hbm [shape: bf16[2,1024,128], index: 2, kind: output, shape index: {}]  }
   0x1   :  { %1922 = sst [smem:[#allocation17_spill]] %s1912_s0 }
   0x2   :  { %1923 = sst [smem:[#allocation18_spill]] %s1914_s2 }
   0x3   :  { %7 = vsyncpa [#allocation3], 0 }
   0x4   :  { %9 = vsyncpa [#allocation3 + $0x1], 0 }
   0x5   :  { %10 = vsyncpa [#allocation6], 0 }
   0x6   :  { %12 = vsyncpa [#allocation6 + $0x1], 0 }
   0x7   :  { %13 = vsyncpa [#allocation4], 0 }
   0x8   :  { %15 = vsyncpa [#allocation4 + $0x1], 0  ;;  %s1442_s9 = smov 0   ;;  %s1444_s10 = smov 0  }
   0x9   :  { %s1446_s11 = smov 0   ;;  %s1448_s12 = smov 0  }
   0xa   :  { %s1450_s13 = smov 0   ;;  %s1452_s14 = smov 0  }
   0xb   :  { %s1454_s15 = smov 0   ;;  %s1456_s16 = smov 0  }
   0xc   :  { %s1458_s17 = smov 0   ;;  %s1460_s18 = smov 0  }
   0xd   :  { %s1462_s19 = smov 0   ;;  %s1464_s20 = smov 0  }
   0xe   :  { %s1466_s21 = smov 0   ;;  %s1468_s22 = smov 0  }
   0xf LB: > { %1924 = sst [smem:[#allocation11_spill]] %s1399_s18  ;;  %s826_s23 = sadd.s32 4294967295, %s1415_s22   ;;  %s1415_s22 = sphi %s1468_s22, %s21_s22   ;;  %s1411_s21 = sphi %s1466_s21, %s1952_s21   ;;  %s1407_s20 = sphi %s1464_s20, %s1964_s20   ;;  %s1403_s19 = sphi %s1462_s19, %s1950_s19   ;;  %s1399_s18 = sphi %s1460_s18, %s1963_s18   ;;  %s1395_s17 = sphi %s1458_s17, %s1962_s17   ;;  %s1391_s16 = sphi %s1456_s16, %s1961_s16   ;;  %s1387_s15 = sphi %s1454_s15, %s1960_s15   ;;  %s1383_s14 = sphi %s1452_s14, %s1959_s14   ;;  %s1379_s13 = sphi %s1450_s13, %s1958_s13   ;;  %s1375_s12 = sphi %s1448_s12, %s1957_s12   ;;  %s1371_s11 = sphi %s1446_s11, %s1956_s11   ;;  %s1367_s10 = sphi %s1444_s10, %s1955_s10   ;;  %s1363_s9 = sphi %s1442_s9, %s1954_s9  }
  0x10   : > { %1925 = sst [smem:[#allocation12_spill]] %s1411_s21  ;;  %p47_p0 = scmp.ne.s32.totalorder %s1395_s17, %s1391_s16 }
  0x11   : > { %p48_p1 = scmp.eq.s32.totalorder %s1415_s22, 0  ;;  %p53_p2 = scmp.ne.s32.totalorder %s1391_s16, %s1387_s15 }
  0x12   : > { %p1517_p3 = scmp.eq.s32.totalorder %s826_s23, 0  ;;  %p1521_p4 = scmp.eq.s32.totalorder %s826_s23, 7 }
  0x13   : > { %p49_p5 = por %p48_p1, %p47_p0  ;;  %p1090_p7 = scmp.lt.s32.totalorder %s1415_s22, 8 }
  0x14   : > { %p1529_p6 = por %p1517_p3, %p53_p2  ;;  %s131_s29 = sand.u32 1, %s1395_s17  }
  0x15   : > { %s880_s30 = sshll.u32 %s1411_s21, 13  ;;  %s830_s3 = sshll.u32 %s131_s29, 9 }
  0x16   : > { %s1929_s0 = sld [smem:[#allocation17_spill]]  ;;  %s135_s7 = scalar_lea.vmem [#allocation2], %s830_s3 }
  0x17   : > { %s143_s8 = sshll.u32 %s135_s7, 4  ;;  %p1541_p8 = pnand %p1090_p7, %p49_p5  ;;  %s144_s8 = int_to_ptr.vmem [resolvable:$true] %s143_s8 }
  0x18   : > { %s132_s23 = scalar_lea.sflag [#allocation3], %s131_s29  ;;  %s1224_s25 = scalar_lea.vmem %s144_s8, 8192 }
  0x19   : > { %p1213_p9 = pneg %p1541_p8  ;;  %p1225_p10 = scmp.ne.s32.totalorder %s144_s8, %s1224_s25 }
  0x1a   : > { %s1417_s24 = smov [#allocation2]  }
  0x1b   : > { %p1227_p11 = pnand %p1225_p10, %p1213_p9  ;;  %s1229_s2 = sshll.u32 %s1417_s24, 4  ;;  %s1230_s2 = int_to_ptr.vmem [resolvable:$false] %s1229_s2 }
  0x1c   : > { %s142_s6 = scalar_lea.hbm %s1929_s0, %s880_s30  ;;  %s1231_s30 = scalar_lea.vmem %s1230_s2, 16384 }
  0x1d   : > { %p1228_p12 = pneg %p1227_p11  ;;  %p1232_p13 = scmp.lt.s32.totalorder %s144_s8, %s1230_s2 }
  0x1e   : > { %p1233_p0 = scmp.lt.s32.totalorder %s1231_s30, %s1224_s25 }
  0x20   : > { %p1234_p2 = por %p1233_p0, %p1232_p13 }
  0x22   : > { %p1235_p5 = pnand %p1234_p2, %p1228_p12 }
  0x24   : > { %1238 = shalt.err (!%p1235_p5)
}
  0x25   : > { %s1418_s3 = smov 256   ;;  %s1419_s2 = smov 16  }
  0x26   : > { %1082 = dma.hbm_to_vmem [thread:$0]  (!%p1541_p8), %s142_s6, 8192, %s144_s8, %s132_s23, %s1418_s3, %s1418_s3, %s1419_s2  }
  0x27   : > { %p837_p9 = scmp.ge.s32.totalorder %s1415_s22, 1  ;;  %p172_p10 = scmp.lt.s32.totalorder %s1415_s22, 9 }
  0x28   : > { %s827_s25 = sadd.s32 4294967294, %s1415_s22   ;;  %s30_s29 = sadd.s32 1, %s1407_s20 }
  0x29   : > { %p1551_p11 = pnand %p837_p9, %p172_p10  ;;  %s66_s4 = sadd.s32 1, %s1383_s14 }
  0x2a   : > { %p31_p12 = scmp.ge.s32.totalorder %s30_s29, 2  ;;  %p73_p13 = scmp.ne.s32.totalorder %s1383_s14, %s1379_s13 }
  0x2b   : > { %p79_p0 = scmp.ne.s32.totalorder %s1379_s13, %s1375_s12  ;;  %s94_s5 = sadd.s32 1, %s1371_s11 }
  0x2c   : > { %s1966_s29 = smov (%p31_p12, %s30_s29), 0  ;;  %s1933_s6 = sadd.s32 1, %s1411_s21 }
  0x2d   : > { %1932 = sst [smem:[#allocation13_spill]] %s1966_s29  ;;  %s1968_s6 = smov (!%p31_p12, %s1933_s6), %s1411_s21 }
  0x2e   : > { %s63_s7 = ssub.s32 %s1407_s20, %s1966_s29  ;;  %p1572_p8 = por %p73_p13, %p48_p1 }
  0x2f   : > { %p35_p2 = scmp.ge.s32.totalorder %s1968_s6, 4  ;;  %p64_p5 = scmp.eq.s32.totalorder %s63_s7, 0 }
  0x30   : > { %p1578_p9 = por %p79_p0, %p1517_p3  ;;  %p104_p10 = scmp.ne.s32.totalorder %s1371_s11, %s1367_s10 }
  0x31   : > { %s1970_s6 = smov (%p35_p2, %s1968_s6), 0  ;;  %p110_p13 = scmp.ne.s32.totalorder %s1367_s10, %s1363_s9 }
  0x32   : > { %1936 = sst [smem:[#allocation14_spill]] %s1970_s6  ;;  %s37_s23 = ssub.s32 %s1411_s21, %s1970_s6 }
  0x33   : > { %s1587_s15 = scalar_select %p64_p5, %s1383_s14, %s66_s4  }
  0x34   : > { %p1593_p1 = por %p1521_p4, %p104_p10  ;;  %p38_p12 = scmp.eq.s32.totalorder %s37_s23, 0 }
  0x35   : > { %1937 = sst [smem:[#allocation15_spill]] %s1587_s15  ;;  %s91_s26 = sor.u32 %s63_s7, %s37_s23 }
  0x36   : > { %s1938_s30 = scalar_select %p1593_p1, 1, 0 }
  0x37   : > { %p92_p3 = scmp.eq.s32.totalorder %s91_s26, 0  ;;  %s1940_s3 = sadd.s32 1, %s1395_s17 }
  0x38   : > { %1939 = sst [smem:[#allocation16_spill]] %s1938_s30  ;;  %p111_p0 = scmp.eq.s32.totalorder %s827_s25, 7 }
  0x39   : > { %s1602_s2 = scalar_select %p38_p12, %s1395_s17, %s1940_s3  }
  0x3a   : > { %s1605_s0 = scalar_select %p92_p3, %s1371_s11, %s94_s5  }
  0x3b   : > { %s153_s4 = sand.u32 1, %s1383_s14   ;;  %p1608_p2 = por %p111_p0, %p110_p13 }
  0x3c   : > { %s834_s29 = sshll.u32 %s153_s4, 8  ;;  %s881_s6 = sshll.u32 %s1407_s20, 12 }
  0x3d   : > { %s1941_s27 = scalar_select %p1608_p2, 1, 0 }
  0x3e   : > { %s157_s21 = scalar_lea.vmem [#allocation5], %s834_s29  ;;  %s163_s7 = scalar_lea.hbm %s1913_s1, %s881_s6 }
  0x3f   : > { %s164_s15 = sshll.u32 %s157_s21, 4  ;;  %p1620_p4 = pnand %p1090_p7, %p1572_p8  ;;  %s165_s15 = int_to_ptr.vmem [resolvable:$true] %s164_s15 }
  0x40   : > { %s154_s25 = scalar_lea.sflag [#allocation6], %s153_s4  ;;  %s1252_s23 = scalar_lea.vmem %s165_s15, 4096 }
  0x41   : > { %p1241_p5 = pneg %p1620_p4  ;;  %p1253_p10 = scmp.ne.s32.totalorder %s165_s15, %s1252_s23 }
  0x42   : > { %s1420_s21 = smov [#allocation5]  }
  0x43   : > { %p1255_p12 = pnand %p1253_p10, %p1241_p5  ;;  %s1257_s29 = sshll.u32 %s1420_s21, 4  ;;  %s1258_s29 = int_to_ptr.vmem [resolvable:$false] %s1257_s29 }
  0x44   : > { %s1259_s18 = scalar_lea.vmem %s1258_s29, 8192  ;;  %p1260_p13 = scmp.lt.s32.totalorder %s165_s15, %s1258_s29 }
  0x45   : > { %p1256_p3 = pneg %p1255_p12  ;;  %p1261_p0 = scmp.lt.s32.totalorder %s1259_s18, %s1252_s23 }
  0x47   : > { %p1262_p2 = por %p1261_p0, %p1260_p13 }
  0x49   : > { %p1263_p1 = pnand %p1262_p2, %p1256_p3 }
  0x4b   : > { %1266 = shalt.err (!%p1263_p1)
}
  0x4c   : > { %s1421_s6 = smov 128   ;;  %s1422_s8 = smov 8  }
  0x4d   : > { %1085 = dma.hbm_to_vmem [thread:$0]  (!%p1620_p4), %s163_s7, 4096, %s165_s15, %s154_s25, %s1421_s6, %s1421_s6, %s1422_s8  }
  0x4e   : > { %176 = sbr.rel (%p1551_p11) target bundleno = 423 (0x1a7), region = 28  ;;  %s178_s30 = sand.u32 (!%p1551_p11), 1, %s1391_s16  }
  0x4f   : > { %s838_s26 = sshll.u32 (!%p1551_p11), %s178_s30, 9  ;;  %s179_s3 = scalar_lea.sflag (!%p1551_p11), [#allocation3], %s178_s30 }
  0x50   : > { %s1631_s4 = scalar_lea.vmem (!%p1551_p11), [#allocation2], %s838_s26 }
  0x53   : > { %1350 = dma.done.wait (%p1529_p6), %s179_s3, 8192  }
  0x54   : > { %1352 = vsyncadd (%p1529_p6), %s179_s3, 4294959104  ;;  %s187_s23 = sand.u32 1, %s1379_s13  }
  0x55   : > { %s839_s5 = sshll.u32 %s187_s23, 8  ;;  %s188_s15 = scalar_lea.sflag [#allocation6], %s187_s23 }
  0x56   : > { %s1638_s7 = scalar_lea.vmem [#allocation5], %s839_s5 }
  0x57   : > { %1354 = dma.done.wait (%p1578_p9), %s188_s15, 4096  }
  0x58   : > { %1356 = vsyncadd (%p1578_p9), %s188_s15, 4294963200  ;;  %v1423_v0 = vmov 0.0   ;;  %v298_v1 = vld [vmem:[%s1638_s7 + $0x78] sm:$0xff]  ;;  %v297_v2 = vld [vmem:[%s1638_s7 + $0x70] sm:$0xff]  ;;  %s214_s28 = sand.u32 1, %s1367_s10   ;;  %s1943_s25 = sld [smem:[#allocation11_spill]] }
  0x59   : > { %315 = vmatprep.subr.mxu0 %v1423_v0  ;;  %1009 = vmatprep.subr.mxu1 %v1423_v0  ;;  %v296_v3 = vld [vmem:[%s1638_s7 + $0x68] sm:$0xff]  ;;  %v295_v4 = vld [vmem:[%s1638_s7 + $0x60] sm:$0xff]  ;;  %v294_v5 = vld [vmem:[%s1638_s7 + $0x58] sm:$0xff]  ;;  %s840_s24 = sshll.u32 %s214_s28, 7  ;;  %s874_s21 = sshll.u32 %s1403_s19, 5 }
  0x5a   : > { %316 = vmatpush1.msra.mxu0 %v298_v1  ;;  %1041 = vmatpush1.msra.mxu1 %v298_v1  ;;  %v293_v6 = vld [vmem:[%s1638_s7 + $0x50] sm:$0xff]  ;;  %v292_v7 = vld [vmem:[%s1638_s7 + $0x48] sm:$0xff]  ;;  %v291_v8 = vld [vmem:[%s1638_s7 + $0x40] sm:$0xff]  ;;  %s1807_s12 = scalar_lea.vmem [#allocation7], %s840_s24  ;;  %s1944_s30 = sld [smem:[#allocation16_spill]] }
  0x5b   : > { %317 = vmatprep.subr.mxu0 %v1423_v0  ;;  %1010 = vmatprep.subr.mxu1 %v1423_v0  ;;  %v290_v9 = vld [vmem:[%s1638_s7 + $0x38] sm:$0xff]  ;;  %v289_v10 = vld [vmem:[%s1638_s7 + $0x30] sm:$0xff]  ;;  %v288_v11 = vld [vmem:[%s1638_s7 + $0x28] sm:$0xff]  ;;  %s716_s8 = sshll.u32 %s1807_s12, 4  ;;  %s1945_s3 = sld [smem:[#allocation18_spill]]  ;;  %s1831_s8 = int_to_ptr.vmem [resolvable:$true] %s716_s8 }
  0x5c   : > { %318 = vmatpush1.msra.mxu0 %v297_v2  ;;  %1042 = vmatpush1.msra.mxu1 %v297_v2  ;;  %v287_v12 = vld [vmem:[%s1638_s7 + $0x20] sm:$0xff]  ;;  %v286_v13 = vld [vmem:[%s1638_s7 + $0x18] sm:$0xff]  ;;  %v285_v14 = vld [vmem:[%s1638_s7 + $0x10] sm:$0xff]  ;;  %s1837_s23 = scalar_lea.sflag [#allocation4], %s214_s28  ;;  %s1267_s5 = scalar_lea.vmem %s1831_s8, 2048 }
  0x5d   : > { %319 = vmatprep.subr.mxu0 %v1423_v0  ;;  %1011 = vmatprep.subr.mxu1 %v1423_v0  ;;  %v284_v15 = vld [vmem:[%s1638_s7 + $0x8] sm:$0xff]  ;;  %v283_v16 = vld [vmem:[%s1638_s7] sm:$0xff]  ;;  %v314_v17 = vld [vmem:[%s1638_s7 + $0xf8] sm:$0xff]  ;;  %p1268_p6 = scmp.ne.s32.totalorder %s1831_s8, %s1267_s5  ;;  %s1424_s15 = smov [#allocation7]  }
  0x5e   : > { %320 = vmatpush1.msra.mxu0 %v296_v3  ;;  %1043 = vmatpush1.msra.mxu1 %v296_v3  ;;  %v313_v18 = vld [vmem:[%s1638_s7 + $0xf0] sm:$0xff]  ;;  %v312_v19 = vld [vmem:[%s1638_s7 + $0xe8] sm:$0xff]  ;;  %v311_v20 = vld [vmem:[%s1638_s7 + $0xe0] sm:$0xff]  ;;  %s875_s29 = sshll.u32 %s1943_s25, 7 }
  0x5f   : > { %321 = vmatprep.subr.mxu0 %v1423_v0  ;;  %1012 = vmatprep.subr.mxu1 %v1423_v0  ;;  %v310_v21 = vld [vmem:[%s1638_s7 + $0xd8] sm:$0xff]  ;;  %v309_v22 = vld [vmem:[%s1638_s7 + $0xd0] sm:$0xff]  ;;  %v308_v23 = vld [vmem:[%s1638_s7 + $0xc8] sm:$0xff]  ;;  %s713_s18 = sadd.s32 %s875_s29, %s874_s21 }
  0x60   : > { %322 = vmatpush1.msra.mxu0 %v295_v4  ;;  %1044 = vmatpush1.msra.mxu1 %v295_v4  ;;  %v307_v24 = vld [vmem:[%s1638_s7 + $0xc0] sm:$0xff]  ;;  %v306_v25 = vld [vmem:[%s1638_s7 + $0xb8] sm:$0xff]  ;;  %v305_v26 = vld [vmem:[%s1638_s7 + $0xb0] sm:$0xff]  ;;  %s876_s6 = sshll.u32 %s713_s18, 6  ;;  %p1946_p7 = scmp.ne.s32.totalorder %s1944_s30, 0 }
  0x61   : > { %323 = vmatprep.subr.mxu0 %v1423_v0  ;;  %1013 = vmatprep.subr.mxu1 %v1423_v0  ;;  %v304_v27 = vld [vmem:[%s1638_s7 + $0xa8] sm:$0xff]  ;;  %v303_v28 = vld [vmem:[%s1638_s7 + $0xa0] sm:$0xff]  ;;  %v302_v29 = vld [vmem:[%s1638_s7 + $0x98] sm:$0xff] }
  0x62   : > { %324 = vmatpush1.msra.mxu0 %v294_v5  ;;  %1045 = vmatpush1.msra.mxu1 %v294_v5  ;;  %v301_v30 = vld [vmem:[%s1638_s7 + $0x90] sm:$0xff]  ;;  %v300_v31 = vld [vmem:[%s1638_s7 + $0x88] sm:$0xff]  ;;  %v299_v32 = vld [vmem:[%s1638_s7 + $0x80] sm:$0xff]  ;;  %p1269_p11 = pnand %p1268_p6, %p1946_p7  ;;  %s1271_s7 = sshll.u32 %s1424_s15, 4  ;;  %s1272_s7 = int_to_ptr.vmem [resolvable:$false] %s1271_s7 }
  0x63   : > { %325 = vmatprep.subr.mxu0 %v1423_v0  ;;  %1014 = vmatprep.subr.mxu1 %v1423_v0  ;;  %v220_v33 = vld [vmem:[%s1631_s4 + $0x8] sm:$0xff]  ;;  %v219_v35 = vld [vmem:[%s1631_s4] sm:$0xff]  ;;  %v222_v37 = vld [vmem:[%s1631_s4 + $0x18] sm:$0xff]  ;;  %s1273_s24 = scalar_lea.vmem %s1272_s7, 4096  ;;  %p1274_p9 = scmp.lt.s32.totalorder %s1831_s8, %s1272_s7 }
  0x64   : > { %326 = vmatpush1.msra.mxu0 %v293_v6  ;;  %1046 = vmatpush1.msra.mxu1 %v293_v6  ;;  %v252_v34 = vld [vmem:[%s1631_s4 + $0x108] sm:$0xff]  ;;  %v251_v36 = vld [vmem:[%s1631_s4 + $0x100] sm:$0xff]  ;;  %v254_v38 = vld [vmem:[%s1631_s4 + $0x118] sm:$0xff]  ;;  %p1270_p8 = pneg %p1269_p11  ;;  %p1275_p1 = scmp.lt.s32.totalorder %s1273_s24, %s1267_s5 }
  0x65   : > { %327 = vmatprep.subr.mxu0 %v1423_v0  ;;  %1015 = vmatprep.subr.mxu1 %v1423_v0  ;;  %v221_v39 = vld [vmem:[%s1631_s4 + $0x10] sm:$0xff]  ;;  %v224_v41 = vld [vmem:[%s1631_s4 + $0x28] sm:$0xff]  ;;  %v223_v43 = vld [vmem:[%s1631_s4 + $0x20] sm:$0xff] }
  0x66   : > { %328 = vmatpush1.msra.mxu0 %v292_v7  ;;  %1047 = vmatpush1.msra.mxu1 %v292_v7  ;;  %v253_v40 = vld [vmem:[%s1631_s4 + $0x110] sm:$0xff]  ;;  %v256_v42 = vld [vmem:[%s1631_s4 + $0x128] sm:$0xff]  ;;  %v255_v44 = vld [vmem:[%s1631_s4 + $0x120] sm:$0xff]  ;;  %p1276_p2 = por %p1275_p1, %p1274_p9 }
  0x67   : > { %329 = vmatprep.subr.mxu0 %v1423_v0  ;;  %1016 = vmatprep.subr.mxu1 %v1423_v0  ;;  %v226_v45 = vld [vmem:[%s1631_s4 + $0x38] sm:$0xff]  ;;  %v225_v47 = vld [vmem:[%s1631_s4 + $0x30] sm:$0xff]  ;;  %v228_v49 = vld [vmem:[%s1631_s4 + $0x48] sm:$0xff] }
  0x68   : > { %330 = vmatpush1.msra.mxu0 %v291_v8  ;;  %1048 = vmatpush1.msra.mxu1 %v291_v8  ;;  %v258_v46 = vld [vmem:[%s1631_s4 + $0x138] sm:$0xff]  ;;  %v257_v48 = vld [vmem:[%s1631_s4 + $0x130] sm:$0xff]  ;;  %v260_v50 = vld [vmem:[%s1631_s4 + $0x148] sm:$0xff]  ;;  %p1277_p4 = pnand %p1276_p2, %p1270_p8 }
  0x69   : > { %331 = vmatprep.subr.mxu0 %v1423_v0  ;;  %1017 = vmatprep.subr.mxu1 %v1423_v0  ;;  %v227_v51 = vld [vmem:[%s1631_s4 + $0x40] sm:$0xff]  ;;  %v230_v53 = vld [vmem:[%s1631_s4 + $0x58] sm:$0xff]  ;;  %v229_v55 = vld [vmem:[%s1631_s4 + $0x50] sm:$0xff] }
  0x6a   : > { %332 = vmatpush1.msra.mxu0 %v290_v9  ;;  %1049 = vmatpush1.msra.mxu1 %v290_v9  ;;  %v259_v52 = vld [vmem:[%s1631_s4 + $0x140] sm:$0xff]  ;;  %v262_v54 = vld [vmem:[%s1631_s4 + $0x158] sm:$0xff]  ;;  %v261_v56 = vld [vmem:[%s1631_s4 + $0x150] sm:$0xff] }
  0x6b   : > { %333 = vmatprep.subr.mxu0 %v1423_v0  ;;  %1018 = vmatprep.subr.mxu1 %v1423_v0  ;;  %v232_v57 = vld [vmem:[%s1631_s4 + $0x68] sm:$0xff]  ;;  %v231_v59 = vld [vmem:[%s1631_s4 + $0x60] sm:$0xff]  ;;  %v234_v61 = vld [vmem:[%s1631_s4 + $0x78] sm:$0xff] }
  0x6c   : > { %334 = vmatpush1.msra.mxu0 %v289_v10  ;;  %1050 = vmatpush1.msra.mxu1 %v289_v10  ;;  %v264_v58 = vld [vmem:[%s1631_s4 + $0x168] sm:$0xff]  ;;  %v263_v60 = vld [vmem:[%s1631_s4 + $0x160] sm:$0xff]  ;;  %v266_v62 = vld [vmem:[%s1631_s4 + $0x178] sm:$0xff] }
  0x6d   : > { %335 = vmatprep.subr.mxu0 %v1423_v0  ;;  %1019 = vmatprep.subr.mxu1 %v1423_v0  ;;  %v233_v63 = vld [vmem:[%s1631_s4 + $0x70] sm:$0xff]  ;;  %v236_v1 = vld [vmem:[%s1631_s4 + $0x88] sm:$0xff]  ;;  %v235_v3 = vld [vmem:[%s1631_s4 + $0x80] sm:$0xff] }
  0x6e   : > { %336 = vmatpush1.msra.mxu0 %v288_v11  ;;  %1051 = vmatpush1.msra.mxu1 %v288_v11  ;;  %v268_v2 = vld [vmem:[%s1631_s4 + $0x188] sm:$0xff]  ;;  %v267_v4 = vld [vmem:[%s1631_s4 + $0x180] sm:$0xff]  ;;  %v238_v5 = vld [vmem:[%s1631_s4 + $0x98] sm:$0xff] }
  0x6f   : > { %337 = vmatprep.subr.mxu0 %v1423_v0  ;;  %1020 = vmatprep.subr.mxu1 %v1423_v0  ;;  %v270_v6 = vld [vmem:[%s1631_s4 + $0x198] sm:$0xff]  ;;  %v237_v7 = vld [vmem:[%s1631_s4 + $0x90] sm:$0xff]  ;;  %v240_v9 = vld [vmem:[%s1631_s4 + $0xa8] sm:$0xff] }
  0x70   : > { %338 = vmatpush1.msra.mxu0 %v287_v12  ;;  %1052 = vmatpush1.msra.mxu1 %v287_v12  ;;  %v269_v8 = vld [vmem:[%s1631_s4 + $0x190] sm:$0xff]  ;;  %v272_v10 = vld [vmem:[%s1631_s4 + $0x1a8] sm:$0xff]  ;;  %v239_v11 = vld [vmem:[%s1631_s4 + $0xa0] sm:$0xff] }
  0x71   : > { %339 = vmatprep.subr.mxu0 %v1423_v0  ;;  %1021 = vmatprep.subr.mxu1 %v1423_v0  ;;  %v271_v12 = vld [vmem:[%s1631_s4 + $0x1a0] sm:$0xff] }
  0x72   : > { %340 = vmatpush1.msra.mxu0 %v286_v13  ;;  %1053 = vmatpush1.msra.mxu1 %v286_v13  ;;  %v242_v13 = vld [vmem:[%s1631_s4 + $0xb8] sm:$0xff] }
  0x73   : > { %341 = vmatprep.subr.mxu0 %v1423_v0  ;;  %1022 = vmatprep.subr.mxu1 %v1423_v0 }
  0x74   : > { %342 = vmatpush1.msra.mxu0 %v285_v14  ;;  %1054 = vmatpush1.msra.mxu1 %v285_v14  ;;  %v274_v14 = vld [vmem:[%s1631_s4 + $0x1b8] sm:$0xff] }
  0x75   : > { %343 = vmatprep.subr.mxu0 %v1423_v0  ;;  %1023 = vmatprep.subr.mxu1 %v1423_v0 }
  0x76   : > { %344 = vmatpush1.msra.mxu0 %v284_v15  ;;  %1055 = vmatpush1.msra.mxu1 %v284_v15  ;;  %v241_v15 = vld [vmem:[%s1631_s4 + $0xb0] sm:$0xff] }
  0x77   : > { %345 = vmatprep.subr.mxu0 %v1423_v0  ;;  %1024 = vmatprep.subr.mxu1 %v1423_v0 }
  0x78   : > { %346 = vmatpush1.msra.mxu0 %v283_v16  ;;  %1056 = vmatpush1.msra.mxu1 %v283_v16  ;;  %v273_v16 = vld [vmem:[%s1631_s4 + $0x1b0] sm:$0xff] }
  0x79   : > { %347 = vmatprep.subr.mxu0 %v1423_v0  ;;  %1025 = vmatprep.subr.mxu1 %v1423_v0 }
  0x7a   : > { %348 = vmatpush2.msra.mxu0 %v314_v17  ;;  %1057 = vmatpush2.msra.mxu1 %v314_v17  ;;  %v244_v17 = vld [vmem:[%s1631_s4 + $0xc8] sm:$0xff] }
  0x7b   : > { %349 = vmatprep.subr.mxu0 %v1423_v0  ;;  %1026 = vmatprep.subr.mxu1 %v1423_v0 }
  0x7c   : > { %350 = vmatpush2.msra.mxu0 %v313_v18  ;;  %1058 = vmatpush2.msra.mxu1 %v313_v18  ;;  %v276_v18 = vld [vmem:[%s1631_s4 + $0x1c8] sm:$0xff] }
  0x7d   : > { %351 = vmatprep.subr.mxu0 %v1423_v0  ;;  %1027 = vmatprep.subr.mxu1 %v1423_v0 }
  0x7e   : > { %352 = vmatpush2.msra.mxu0 %v312_v19  ;;  %1059 = vmatpush2.msra.mxu1 %v312_v19  ;;  %v243_v19 = vld [vmem:[%s1631_s4 + $0xc0] sm:$0xff] }
  0x7f   : > { %353 = vmatprep.subr.mxu0 %v1423_v0  ;;  %1028 = vmatprep.subr.mxu1 %v1423_v0 }
  0x80   : > { %354 = vmatpush2.msra.mxu0 %v311_v20  ;;  %1060 = vmatpush2.msra.mxu1 %v311_v20  ;;  %v275_v20 = vld [vmem:[%s1631_s4 + $0x1c0] sm:$0xff] }
  0x81   : > { %355 = vmatprep.subr.mxu0 %v1423_v0  ;;  %1029 = vmatprep.subr.mxu1 %v1423_v0 }
  0x82   : > { %356 = vmatpush2.msra.mxu0 %v310_v21  ;;  %1061 = vmatpush2.msra.mxu1 %v310_v21  ;;  %v246_v21 = vld [vmem:[%s1631_s4 + $0xd8] sm:$0xff] }
  0x83   : > { %357 = vmatprep.subr.mxu0 %v1423_v0  ;;  %1030 = vmatprep.subr.mxu1 %v1423_v0 }
  0x84   : > { %358 = vmatpush2.msra.mxu0 %v309_v22  ;;  %1062 = vmatpush2.msra.mxu1 %v309_v22  ;;  %v278_v22 = vld [vmem:[%s1631_s4 + $0x1d8] sm:$0xff] }
  0x85   : > { %359 = vmatprep.subr.mxu0 %v1423_v0  ;;  %1031 = vmatprep.subr.mxu1 %v1423_v0 }
  0x86   : > { %360 = vmatpush2.msra.mxu0 %v308_v23  ;;  %1063 = vmatpush2.msra.mxu1 %v308_v23  ;;  %v245_v23 = vld [vmem:[%s1631_s4 + $0xd0] sm:$0xff] }
  0x87   : > { %361 = vmatprep.subr.mxu0 %v1423_v0  ;;  %1032 = vmatprep.subr.mxu1 %v1423_v0 }
  0x88   : > { %362 = vmatpush2.msra.mxu0 %v307_v24  ;;  %1064 = vmatpush2.msra.mxu1 %v307_v24  ;;  %v277_v24 = vld [vmem:[%s1631_s4 + $0x1d0] sm:$0xff] }
  0x89   : > { %363 = vmatprep.subr.mxu0 %v1423_v0  ;;  %1033 = vmatprep.subr.mxu1 %v1423_v0 }
  0x8a   : > { %364 = vmatpush2.msra.mxu0 %v306_v25  ;;  %1065 = vmatpush2.msra.mxu1 %v306_v25  ;;  %v248_v25 = vld [vmem:[%s1631_s4 + $0xe8] sm:$0xff] }
  0x8b   : > { %365 = vmatprep.subr.mxu0 %v1423_v0  ;;  %1034 = vmatprep.subr.mxu1 %v1423_v0 }
  0x8c   : > { %366 = vmatpush2.msra.mxu0 %v305_v26  ;;  %1066 = vmatpush2.msra.mxu1 %v305_v26  ;;  %v280_v26 = vld [vmem:[%s1631_s4 + $0x1e8] sm:$0xff] }
  0x8d   : > { %367 = vmatprep.subr.mxu0 %v1423_v0  ;;  %1035 = vmatprep.subr.mxu1 %v1423_v0 }
  0x8e   : > { %368 = vmatpush2.msra.mxu0 %v304_v27  ;;  %1067 = vmatpush2.msra.mxu1 %v304_v27  ;;  %v247_v27 = vld [vmem:[%s1631_s4 + $0xe0] sm:$0xff] }
  0x8f   : > { %369 = vmatprep.subr.mxu0 %v1423_v0  ;;  %1036 = vmatprep.subr.mxu1 %v1423_v0 }
  0x90   : > { %370 = vmatpush2.msra.mxu0 %v303_v28  ;;  %1068 = vmatpush2.msra.mxu1 %v303_v28  ;;  %v279_v28 = vld [vmem:[%s1631_s4 + $0x1e0] sm:$0xff] }
  0x91   : > { %371 = vmatprep.subr.mxu0 %v1423_v0  ;;  %1037 = vmatprep.subr.mxu1 %v1423_v0 }
  0x92   : > { %372 = vmatpush2.msra.mxu0 %v302_v29  ;;  %1069 = vmatpush2.msra.mxu1 %v302_v29  ;;  %v250_v29 = vld [vmem:[%s1631_s4 + $0xf8] sm:$0xff] }
  0x93   : > { %373 = vmatprep.subr.mxu0 %v1423_v0  ;;  %1038 = vmatprep.subr.mxu1 %v1423_v0 }
  0x94   : > { %374 = vmatpush2.msra.mxu0 %v301_v30  ;;  %1070 = vmatpush2.msra.mxu1 %v301_v30  ;;  %v282_v30 = vld [vmem:[%s1631_s4 + $0x1f8] sm:$0xff] }
  0x95   : > { %375 = vmatprep.subr.mxu0 %v1423_v0  ;;  %1039 = vmatprep.subr.mxu1 %v1423_v0 }
  0x96   : > { %376 = vmatpush2.msra.mxu0 %v300_v31  ;;  %1071 = vmatpush2.msra.mxu1 %v300_v31  ;;  %v249_v31 = vld [vmem:[%s1631_s4 + $0xf0] sm:$0xff] }
  0x97   : > { %377 = vmatprep.subr.mxu0 %v1423_v0  ;;  %1040 = vmatprep.subr.mxu1 %v1423_v0  ;;  %v265_v0 = vld [vmem:[%s1631_s4 + $0x170] sm:$0xff] }
  0x98   : > { %378 = vmatpush2.msra.mxu0 %v299_v32  ;;  %1072 = vmatpush2.msra.mxu1 %v299_v32  ;;  %v281_v32 = vld [vmem:[%s1631_s4 + $0x1f0] sm:$0xff]  ;;  %s1829_s4 = scalar_lea.hbm %s1945_s3, %s876_s6 }
  0x99   : > { %379 = vmatprep.mubr.f32.mxu0 %v220_v33  ;;  %459 = vmatprep.mubr.f32.mxu1 %v252_v34 }
  0x9a   : > { %380 = vmatmul.mubr.f32.vlgmr.msra.gmra.mxu0 %v219_v35  ;;  %460 = vmatmul.mubr.f32.vlgmr.msra.gmra.mxu1 %v251_v36 }
  0x9b   : > { %384 = vmatprep.mubr.f32.mxu0 %v222_v37  ;;  %464 = vmatprep.mubr.f32.mxu1 %v254_v38 }
  0x9e   : > { %385 = vmatmul.mubr.f32.gmra.mxu0 %v221_v39  ;;  %465 = vmatmul.mubr.f32.gmra.mxu1 %v253_v40 }
  0x9f   : > { %389 = vmatprep.mubr.f32.mxu0 %v224_v41  ;;  %469 = vmatprep.mubr.f32.mxu1 %v256_v42 }
  0xa2   : > { %390 = vmatmul.mubr.f32.gmra.mxu0 %v223_v43  ;;  %470 = vmatmul.mubr.f32.gmra.mxu1 %v255_v44 }
  0xa3   : > { %394 = vmatprep.mubr.f32.mxu0 %v226_v45  ;;  %474 = vmatprep.mubr.f32.mxu1 %v258_v46 }
  0xa6   : > { %395 = vmatmul.mubr.f32.gmra.mxu0 %v225_v47  ;;  %475 = vmatmul.mubr.f32.gmra.mxu1 %v257_v48 }
  0xa7   : > { %399 = vmatprep.mubr.f32.mxu0 %v228_v49  ;;  %479 = vmatprep.mubr.f32.mxu1 %v260_v50 }
  0xaa   : > { %400 = vmatmul.mubr.f32.gmra.mxu0 %v227_v51  ;;  %480 = vmatmul.mubr.f32.gmra.mxu1 %v259_v52 }
  0xab   : > { %404 = vmatprep.mubr.f32.mxu0 %v230_v53  ;;  %484 = vmatprep.mubr.f32.mxu1 %v262_v54 }
  0xae   : > { %405 = vmatmul.mubr.f32.gmra.mxu0 %v229_v55  ;;  %485 = vmatmul.mubr.f32.gmra.mxu1 %v261_v56 }
  0xaf   : > { %409 = vmatprep.mubr.f32.mxu0 %v232_v57  ;;  %489 = vmatprep.mubr.f32.mxu1 %v264_v58 }
  0xb2   : > { %410 = vmatmul.mubr.f32.gmra.mxu0 %v231_v59  ;;  %490 = vmatmul.mubr.f32.gmra.mxu1 %v263_v60 }
  0xb3   : > { %414 = vmatprep.mubr.f32.mxu0 %v234_v61  ;;  %494 = vmatprep.mubr.f32.mxu1 %v266_v62 }
  0xb6   : > { %415 = vmatmul.mubr.f32.gmra.mxu0 %v233_v63  ;;  %495 = vmatmul.mubr.f32.gmra.mxu1 %v265_v0 }
  0xb7   : > { %419 = vmatprep.mubr.f32.mxu0 %v236_v1  ;;  %499 = vmatprep.mubr.f32.mxu1 %v268_v2 }
  0xba   : > { %420 = vmatmul.mubr.f32.gmra.mxu0 %v235_v3  ;;  %500 = vmatmul.mubr.f32.gmra.mxu1 %v267_v4 }
  0xbb   : > { %424 = vmatprep.mubr.f32.mxu0 %v238_v5  ;;  %504 = vmatprep.mubr.f32.mxu1 %v270_v6 }
  0xbe   : > { %425 = vmatmul.mubr.f32.gmra.mxu0 %v237_v7  ;;  %505 = vmatmul.mubr.f32.gmra.mxu1 %v269_v8 }
  0xbf   : > { %429 = vmatprep.mubr.f32.mxu0 %v240_v9  ;;  %509 = vmatprep.mubr.f32.mxu1 %v272_v10 }
  0xc2   : > { %430 = vmatmul.mubr.f32.gmra.mxu0 %v239_v11  ;;  %510 = vmatmul.mubr.f32.gmra.mxu1 %v271_v12 }
  0xc3   : > { %434 = vmatprep.mubr.f32.mxu0 %v242_v13  ;;  %514 = vmatprep.mubr.f32.mxu1 %v274_v14 }
  0xc6   : > { %435 = vmatmul.mubr.f32.gmra.mxu0 %v241_v15  ;;  %515 = vmatmul.mubr.f32.gmra.mxu1 %v273_v16 }
  0xc7   : > { %439 = vmatprep.mubr.f32.mxu0 %v244_v17  ;;  %519 = vmatprep.mubr.f32.mxu1 %v276_v18 }
  0xca   : > { %440 = vmatmul.mubr.f32.gmra.mxu0 %v243_v19  ;;  %520 = vmatmul.mubr.f32.gmra.mxu1 %v275_v20 }
  0xcb   : > { %444 = vmatprep.mubr.f32.mxu0 %v246_v21  ;;  %524 = vmatprep.mubr.f32.mxu1 %v278_v22 }
  0xce   : > { %445 = vmatmul.mubr.f32.gmra.mxu0 %v245_v23  ;;  %525 = vmatmul.mubr.f32.gmra.mxu1 %v277_v24 }
  0xcf   : > { %449 = vmatprep.mubr.f32.mxu0 %v248_v25  ;;  %529 = vmatprep.mubr.f32.mxu1 %v280_v26 }
  0xd2   : > { %450 = vmatmul.mubr.f32.gmra.mxu0 %v247_v27  ;;  %530 = vmatmul.mubr.f32.gmra.mxu1 %v279_v28 }
  0xd3   : > { %454 = vmatprep.mubr.f32.mxu0 %v250_v29  ;;  %534 = vmatprep.mubr.f32.mxu1 %v282_v30 }
  0xd6   : > { %455 = vmatmul.mubr.f32.gmra.mxu0 %v249_v31  ;;  %535 = vmatmul.mubr.f32.gmra.mxu1 %v281_v32 }
 0x15a   : > { %v381_v33 = vpop.f32.mrf.mxu0  ;;  %v461_v34 = vpop.f32.mrf.mxu1 }
 0x15c   : > { %v383_v35 = vpop.f32.mrf.mxu0  ;;  %v463_v36 = vpop.f32.mrf.mxu1 }
 0x15e   : > { %v386_v37 = vpop.f32.mrf.mxu0  ;;  %v466_v38 = vpop.f32.mrf.mxu1 }
 0x15f   : > { %v917_v39 = vpack.c.bf16 %v386_v37, %v381_v33  ;;  %v957_v40 = vpack.c.bf16 %v466_v38, %v461_v34 }
 0x160   : > { %v388_v41 = vpop.f32.mrf.mxu0  ;;  %v468_v42 = vpop.f32.mrf.mxu1 }
 0x161   : > { %918 = vst [vmem:[%s1807_s12] sm:$0xff] %v917_v39   ;;  %1001 = vst [vmem:[%s1807_s12 + $0x40] sm:$0xff] %v957_v40  }
 0x162   : > { %v391_v43 = vpop.f32.mrf.mxu0  ;;  %v471_v44 = vpop.f32.mrf.mxu1 }
 0x164   : > { %v393_v45 = vpop.f32.mrf.mxu0  ;;  %v473_v46 = vpop.f32.mrf.mxu1 }
 0x166   : > { %v396_v47 = vpop.f32.mrf.mxu0  ;;  %v476_v48 = vpop.f32.mrf.mxu1 }
 0x167   : > { %v922_v49 = vpack.c.bf16 %v396_v47, %v391_v43  ;;  %v962_v50 = vpack.c.bf16 %v476_v48, %v471_v44 }
 0x168   : > { %v398_v51 = vpop.f32.mrf.mxu0  ;;  %v478_v52 = vpop.f32.mrf.mxu1 }
 0x169   : > { %994 = vst [vmem:[%s1807_s12 + $0x8] sm:$0xff] %v922_v49   ;;  %1002 = vst [vmem:[%s1807_s12 + $0x48] sm:$0xff] %v962_v50  }
 0x16a   : > { %v401_v53 = vpop.f32.mrf.mxu0  ;;  %v481_v54 = vpop.f32.mrf.mxu1 }
 0x16c   : > { %v403_v55 = vpop.f32.mrf.mxu0  ;;  %v483_v56 = vpop.f32.mrf.mxu1 }
 0x16e   : > { %v406_v57 = vpop.f32.mrf.mxu0  ;;  %v486_v58 = vpop.f32.mrf.mxu1 }
 0x16f   : > { %v927_v59 = vpack.c.bf16 %v406_v57, %v401_v53  ;;  %v967_v60 = vpack.c.bf16 %v486_v58, %v481_v54 }
 0x170   : > { %v408_v61 = vpop.f32.mrf.mxu0  ;;  %v488_v62 = vpop.f32.mrf.mxu1 }
 0x171   : > { %995 = vst [vmem:[%s1807_s12 + $0x10] sm:$0xff] %v927_v59   ;;  %1003 = vst [vmem:[%s1807_s12 + $0x50] sm:$0xff] %v967_v60  }
 0x172   : > { %v411_v63 = vpop.f32.mrf.mxu0  ;;  %v491_v0 = vpop.f32.mrf.mxu1 }
 0x174   : > { %v413_v1 = vpop.f32.mrf.mxu0  ;;  %v493_v2 = vpop.f32.mrf.mxu1 }
 0x176   : > { %v416_v3 = vpop.f32.mrf.mxu0  ;;  %v496_v4 = vpop.f32.mrf.mxu1 }
 0x177   : > { %v932_v5 = vpack.c.bf16 %v416_v3, %v411_v63  ;;  %v972_v6 = vpack.c.bf16 %v496_v4, %v491_v0 }
 0x178   : > { %v418_v7 = vpop.f32.mrf.mxu0  ;;  %v498_v8 = vpop.f32.mrf.mxu1 }
 0x179   : > { %996 = vst [vmem:[%s1807_s12 + $0x18] sm:$0xff] %v932_v5   ;;  %1004 = vst [vmem:[%s1807_s12 + $0x58] sm:$0xff] %v972_v6  }
 0x17a   : > { %v421_v9 = vpop.f32.mrf.mxu0  ;;  %v501_v10 = vpop.f32.mrf.mxu1 }
 0x17c   : > { %v423_v11 = vpop.f32.mrf.mxu0  ;;  %v503_v12 = vpop.f32.mrf.mxu1 }
 0x17e   : > { %v426_v13 = vpop.f32.mrf.mxu0  ;;  %v506_v14 = vpop.f32.mrf.mxu1 }
 0x17f   : > { %v937_v15 = vpack.c.bf16 %v426_v13, %v421_v9  ;;  %v977_v16 = vpack.c.bf16 %v506_v14, %v501_v10 }
 0x180   : > { %v428_v17 = vpop.f32.mrf.mxu0  ;;  %v508_v18 = vpop.f32.mrf.mxu1 }
 0x181   : > { %997 = vst [vmem:[%s1807_s12 + $0x20] sm:$0xff] %v937_v15   ;;  %1005 = vst [vmem:[%s1807_s12 + $0x60] sm:$0xff] %v977_v16  }
 0x182   : > { %v431_v19 = vpop.f32.mrf.mxu0  ;;  %v511_v20 = vpop.f32.mrf.mxu1 }
 0x184   : > { %v433_v21 = vpop.f32.mrf.mxu0  ;;  %v513_v22 = vpop.f32.mrf.mxu1 }
 0x186   : > { %v436_v23 = vpop.f32.mrf.mxu0  ;;  %v516_v24 = vpop.f32.mrf.mxu1 }
 0x187   : > { %v942_v25 = vpack.c.bf16 %v436_v23, %v431_v19  ;;  %v982_v26 = vpack.c.bf16 %v516_v24, %v511_v20 }
 0x188   : > { %v438_v27 = vpop.f32.mrf.mxu0  ;;  %v518_v28 = vpop.f32.mrf.mxu1 }
 0x189   : > { %998 = vst [vmem:[%s1807_s12 + $0x28] sm:$0xff] %v942_v25   ;;  %1006 = vst [vmem:[%s1807_s12 + $0x68] sm:$0xff] %v982_v26  }
 0x18a   : > { %v441_v29 = vpop.f32.mrf.mxu0  ;;  %v521_v30 = vpop.f32.mrf.mxu1 }
 0x18c   : > { %v443_v31 = vpop.f32.mrf.mxu0  ;;  %v523_v32 = vpop.f32.mrf.mxu1 }
 0x18e   : > { %v446_v33 = vpop.f32.mrf.mxu0  ;;  %v526_v34 = vpop.f32.mrf.mxu1 }
 0x18f   : > { %v947_v35 = vpack.c.bf16 %v446_v33, %v441_v29  ;;  %v987_v36 = vpack.c.bf16 %v526_v34, %v521_v30 }
 0x190   : > { %v448_v37 = vpop.f32.mrf.mxu0  ;;  %v528_v38 = vpop.f32.mrf.mxu1 }
 0x191   : > { %999 = vst [vmem:[%s1807_s12 + $0x30] sm:$0xff] %v947_v35   ;;  %1007 = vst [vmem:[%s1807_s12 + $0x70] sm:$0xff] %v987_v36  }
 0x192   : > { %v451_v39 = vpop.f32.mrf.mxu0  ;;  %v531_v40 = vpop.f32.mrf.mxu1 }
 0x194   : > { %v453_v41 = vpop.f32.mrf.mxu0  ;;  %v533_v42 = vpop.f32.mrf.mxu1 }
 0x196   : > { %v456_v43 = vpop.f32.mrf.mxu0  ;;  %v536_v44 = vpop.f32.mrf.mxu1 }
 0x197   : > { %v952_v45 = vpack.c.bf16 %v456_v43, %v451_v39  ;;  %v992_v46 = vpack.c.bf16 %v536_v44, %v531_v40 }
 0x198   : > { %v458_v47 = vpop.f32.mrf.mxu0  ;;  %v538_v48 = vpop.f32.mrf.mxu1 }
 0x199   : > { %1000 = vst [vmem:[%s1807_s12 + $0x38] sm:$0xff] %v952_v45   ;;  %1008 = vst [vmem:[%s1807_s12 + $0x78] sm:$0xff] %v992_v46  }
 0x19a   : > { %1280 = shalt.err (!%p1277_p4)
}
 0x19b   : > { %s1281_s28 = scalar_lea.hbm %s1829_s4, 2048  ;;  %s1285_s21 = scalar_lea.hbm %s1945_s3, 16384 }
 0x19c   : > { %p1282_p5 = scmp.ne.s32.totalorder %s1829_s4, %s1281_s28  ;;  %p1286_p3 = scmp.lt.s32.totalorder %s1829_s4, %s1945_s3 }
 0x19d   : > { %p1287_p13 = scmp.lt.s32.totalorder %s1285_s21, %s1281_s28 }
 0x19e   : > { %p1283_p10 = pnand %p1282_p5, %p1946_p7 }
 0x19f   : > { %p1288_p0 = por %p1287_p13, %p1286_p3 }
 0x1a0   : > { %p1284_p12 = pneg %p1283_p10 }
 0x1a2   : > { %p1289_p6 = pnand %p1288_p0, %p1284_p12 }
 0x1a4   : > { %1292 = shalt.err (!%p1289_p6)
}
 0x1a5   : > { %s1425_s6 = smov 64   ;;  %s1426_s19 = smov 4  }
 0x1a6   : > { %1077 = dma.vmem_to_hbm [thread:$0]  (%p1946_p7), %s1831_s8, 2048, %s1829_s4, %s1837_s23, %s1425_s6, %s1425_s6, %s1426_s19  }
 0x1a7 PF: > { %p1091_p11 = scmp.ge.s32.totalorder %s1415_s22, 2  ;;  %s731_s26 = sand.u32 1, %s1363_s9  }
 0x1a8   : > { %p1947_p8 = scmp.ne.s32.totalorder %s1941_s27, 0  ;;  %s732_s5 = scalar_lea.sflag [#allocation4], %s731_s26 }
 0x1aa   : > { %p1087_p9 = pnand %p1091_p11, %p1947_p8 }
 0x1ac   : > { %p1088_p1 = pneg %p1087_p9 }
 0x1ae   : > { %1358 = dma.done.wait (%p1088_p1), %s732_s5, 2048  }
 0x1af   : > { %1360 = vsyncadd (%p1088_p1), %s732_s5, 4294965248  ;;  %s21_s22 = sadd.s32 1, %s1415_s22   ;;  %s1949_s8 = sld [smem:[#allocation15_spill]] }
 0x1b0   : > { %p1865_p2 = scmp.ge.s32.totalorder %s21_s22, 10   ;;  %s1950_s19 = sld [smem:[#allocation12_spill]] }
 0x1b1   : > { %s1951_s27 = sld [smem:[#allocation13_spill]]  ;;  %s1954_s9 = smov %s1367_s10 }
 0x1b2   : > { %s1952_s21 = sld [smem:[#allocation14_spill]]  ;;  %s1955_s10 = smov %s1371_s11 }
 0x1b3   : > { %s1956_s11 = smov %s1605_s0  ;;  %s1957_s12 = smov %s1379_s13 }
 0x1b4   : > { %s1958_s13 = smov %s1383_s14  ;;  %s1960_s15 = smov %s1391_s16 }
 0x1b5   : > { %s1959_s14 = smov %s1949_s8  ;;  %s1961_s16 = smov %s1395_s17 }
 0x1b6   : > { %s1962_s17 = smov %s1602_s2  ;;  %s1963_s18 = smov %s1407_s20 }
 0x1b7   : > { %s1964_s20 = smov %s1951_s27  ;;  %20 = sbr.rel (!%p1865_p2) target bundleno = 15 (0xf), region = 86 }
 0x1bc   :  { %737 = vsyncpa [#allocation3], 1 }
 0x1bd   :  { %739 = vsyncpa [#allocation3 + $0x1], 1 }
 0x1be   :  { %740 = vsyncpa [#allocation6], 1 }
 0x1bf   :  { %742 = vsyncpa [#allocation6 + $0x1], 1 }
 0x1c0   :  { %743 = vsyncpa [#allocation4], 1 }
 0x1c1   :  { %745 = vsyncpa [#allocation4 + $0x1], 1 }

</bundles_post_ra>
